<compile_context>
chip_gen: v7x
topology: tpu7x:2x2x1
jax: 0.10.0
libtpu: 0.0.40
codegen_flags: <defaults>
</compile_context>

<pallas_src>
from functools import partial

import jax
import jax.numpy as jnp
from jax.experimental import pallas as pl
from jax.experimental.pallas import tpu as pltpu


_LANE = 128
_BATCH_ALIGN = 16      # bf16 sublane packing: keep batch tiles multiples of 16


def _round_up(x, m):
    return ((x + m - 1) // m) * m


def _cdiv(a, b):
    return -(-a // b)


# --------------------------------------------------------------------------
# Kernel
# --------------------------------------------------------------------------
def _make_actor1_arm_kernel(num_layers, negative_slope=0.2):
    """Fused MLP + softmax kernel on padded VMEM blocks.

    x_ref: [TB, DIN] bf16        (DIN = round_up(in_dim, 16); no 128-lane pad)
    w_ref: [L, P, P] bf16        (weights, [in, out] layout, zero-padded)
    b_ref: [L, 1, P] f32         (biases; last layer has -1e30 in padded lanes)
    o_ref: [TB, P]  bf16         (softmax probs in the first out_dim lanes)

    Zero padding is exact through every Linear+LeakyReLU layer; the softmax
    mask is pre-baked into the last-layer bias, so no in-kernel masking.
    """

    def kernel(x_ref, w_ref, b_ref, o_ref):
        din = x_ref.shape[-1]
        h = x_ref[...]                                        # [TB, DIN] bf16
        for l in range(num_layers):
            w = w_ref[0, :din, :] if l == 0 else w_ref[l]     # [*, P] bf16
            lhs = h if l == 0 else h.astype(w.dtype)
            h = jnp.dot(lhs, w, preferred_element_type=jnp.float32) + b_ref[l]
            if l < num_layers - 1:
                # LeakyReLU(0.2) == max(h, 0.2*h) for slope in [0, 1].
                h = jnp.maximum(h, negative_slope * h)

        # Numerically-stable softmax in f32; padded lanes already carry -1e30
        # via the baked bias, so exp() vanishes there without explicit masking.
        m = jnp.max(h, axis=-1, keepdims=True)
        e = jnp.exp(h - m)
        inv = pl.reciprocal(jnp.sum(e, axis=-1, keepdims=True), approx=True)
        o_ref[...] = (e * inv).astype(o_ref.dtype)

    return kernel


# --------------------------------------------------------------------------
# One-time parameter packing (hoisted out of the per-call forward path)
# --------------------------------------------------------------------------
def pack_actor1_arm_params(weights, biases, *, mxu_dtype=jnp.bfloat16,
                           mask_value=-1e30):
    """Pack per-layer params into two padded operands (call once at init).

    weights: list of [in_l, out_l] arrays ([in, out] layout, i.e. transposed
             vs. PyTorch's [out, in]).
    biases:  list of [1, out_l] (or [out_l]) arrays.
    Returns (w_packed [L,P,P] bf16, b_packed [L,1,P] f32, out_dim).
    """
    assert len(weights) == len(biases)
    num_layers = len(weights)
    dims = [int(weights[0].shape[0])] + [int(w.shape[1]) for w in weights]
    out_dim = dims[-1]
    P = _round_up(max(dims), _LANE)

    w_packed = jnp.zeros((num_layers, P, P), mxu_dtype)
    b_packed = jnp.zeros((num_layers, 1, P), jnp.float32)
    for l, (w, b) in enumerate(zip(weights, biases)):
        di, do = w.shape
        w_packed = w_packed.at[l, :di, :do].set(w.astype(mxu_dtype))
        b_packed = b_packed.at[l, :, :do].set(
            b.reshape(1, -1).astype(jnp.float32))
    # Bake the softmax lane mask into the last bias: padded weight columns are
    # zero, so -1e30 here alone drives exp() of padded lanes to 0 (f32-safe).
    b_packed = b_packed.at[num_layers - 1, :, out_dim:].set(mask_value)
    return w_packed, b_packed, out_dim


# --------------------------------------------------------------------------
# Forward wrapper (hot path: pad/cast x, launch kernel, slice output)
# --------------------------------------------------------------------------
@partial(jax.jit, static_argnames=("out_dim", "tile_batch"))
def actor1_arm_forward(x, w_packed, b_packed, *, out_dim, tile_batch=1024):
    """Run the fused Actor1_Arm forward pass as a single Pallas kernel.

    x:        [batch, in_dim] float (any float dtype; cast to bf16 for the MXU)
    w_packed: [L, P, P] bf16   (from pack_actor1_arm_params)
    b_packed: [L, 1, P] f32
    Returns:  [batch, out_dim] float32 softmax probabilities.
    """
    batch, in_dim = x.shape
    num_layers, P, _ = w_packed.shape
    in_dim_p = min(P, _round_up(in_dim, _BATCH_ALIGN))   # bf16 sublane-aligned

    # ---- Batch tiling ------------------------------------------------------
    padded0 = _round_up(batch, _BATCH_ALIGN)
    tb_cap = max(_BATCH_ALIGN, _round_up(int(tile_batch), _BATCH_ALIGN))
    n_steps = _cdiv(padded0, tb_cap)
    if n_steps == 1 and padded0 >= 2 * _BATCH_ALIGN:
        # v7x megacore: give the "parallel" grid axis >= 2 steps so both
        # TensorCores get work (harmless elsewhere).
        n_steps = 2
    tb = _round_up(_cdiv(padded0, n_steps), _BATCH_ALIGN)
    padded_batch = tb * n_steps

    # ---- Fused pad + bf16 cast (one producer pass; no extra f32 slab). -----
    x_in = jnp.pad(x.astype(jnp.bfloat16),
                   ((0, padded_batch - batch), (0, in_dim_p - in_dim)))

    kernel = _make_actor1_arm_kernel(num_layers)

    flops = 2 * padded_batch * num_layers * P * P
    bytes_accessed = (x_in.size * x_in.dtype.itemsize
                      + w_packed.size * w_packed.dtype.itemsize
                      + b_packed.size * b_packed.dtype.itemsize
                      + padded_batch * P * 2)                # bf16 output slab

    out_padded = pl.pallas_call(
        kernel,
        grid=(padded_batch // tb,),
        in_specs=[
            pl.BlockSpec((tb, in_dim_p), lambda i: (i, 0)),          # x tile
            pl.BlockSpec((num_layers, P, P), lambda i: (0, 0, 0)),   # weights
            pl.BlockSpec((num_layers, 1, P), lambda i: (0, 0, 0)),   # biases
        ],
        out_specs=pl.BlockSpec((tb, P), lambda i: (i, 0)),
        out_shape=jax.ShapeDtypeStruct((padded_batch, P), jnp.bfloat16),
        compiler_params=pltpu.CompilerParams(
            dimension_semantics=("parallel",)),
        cost_estimate=pl.CostEstimate(
            flops=flops,
            transcendentals=padded_batch * P,
            bytes_accessed=bytes_accessed),
    )(x_in, w_packed, b_packed)

    # Strip batch padding / padded lanes; return f32 (values carry bf16
    # writeback precision — a deliberate bandwidth/precision tradeoff).
    return out_padded[:batch, :out_dim].astype(jnp.float32)


# --------------------------------------------------------------------------
# Init + pure-JAX reference
# --------------------------------------------------------------------------
def init_actor1_arm_params(key, shared_output_dim, arm_list, action1_dim):
    """PyTorch nn.Linear default init (U[-1/sqrt(fan_in), 1/sqrt(fan_in)]).

    Returns weights in [in, out] layout (transposed vs. PyTorch's [out, in]).
    """
    dims = [shared_output_dim] + list(arm_list) + [action1_dim]
    weights, biases = [], []
    for l in range(len(dims) - 1):
        fan_in, fan_out = dims[l], dims[l + 1]
        key, wk, bk = jax.random.split(key, 3)
        bound = 1.0 / jnp.sqrt(jnp.float32(fan_in))
        w = jax.random.uniform(wk, (fan_in, fan_out), jnp.float32,
                               minval=-bound, maxval=bound)
        b = jax.random.uniform(bk, (1, fan_out), jnp.float32,
                               minval=-bound, maxval=bound)
        weights.append(w)
        biases.append(b)
    return weights, biases


def reference_forward(x, weights, biases, mxu_dtype=jnp.float32,
                      out_dtype=jnp.float32):
    """Pure-JAX reference. mxu_dtype/out_dtype emulate the kernel precision."""
    h = x.astype(jnp.float32)
    n = len(weights)
    for l in range(n):
        h = jnp.dot(h.astype(mxu_dtype), weights[l].astype(mxu_dtype),
                    preferred_element_type=jnp.float32)
        h = h + biases[l].astype(jnp.float32)
        if l < n - 1:
            h = jnp.where(h > 0, h, 0.2 * h)
    probs = jax.nn.softmax(h, axis=-1)
    return probs.astype(out_dtype).astype(jnp.float32)


# --------------------------------------------------------------------------
if __name__ == "__main__":
    # Small shapes consistent with the module:
    #   shared_output_dim=32, arm_list=[64, 32], action1_dim=16, batch=8
    shared_output_dim = 32
    arm_list = [64, 32]
    action1_dim = 16
    batch = 8

    key = jax.random.PRNGKey(0)
    key, xk = jax.random.split(key)
    x = jax.random.normal(xk, (batch, shared_output_dim), jnp.float32)

    weights, biases = init_actor1_arm_params(
        key, shared_output_dim, arm_list, action1_dim)

    # Pack once at init time (hoisted out of the per-call hot path).
    w_packed, b_packed, out_dim = pack_actor1_arm_params(weights, biases)

    out = actor1_arm_forward(x, w_packed, b_packed, out_dim=out_dim)
    out = jax.block_until_ready(out)

    assert out.shape == (batch, action1_dim)
    # Probabilities sum to ~1 (approx reciprocal + bf16 writeback).
    assert jnp.allclose(jnp.sum(out, axis=-1), 1.0, atol=2e-2)

    # Precision-matched reference (bf16 MXU inputs, f32 acc, bf16 output cast).
    ref_bf16 = reference_forward(x, weights, biases,
                                 mxu_dtype=jnp.bfloat16,
                                 out_dtype=jnp.bfloat16)
    assert jnp.allclose(out, ref_bf16, atol=5e-3, rtol=5e-3)

    # Full-f32 reference (exact PyTorch semantics), bf16-sized tolerance.
    ref_f32 = reference_forward(x, weights, biases)
    assert jnp.allclose(out, ref_f32, atol=2e-2, rtol=2e-2)

    print("KERNEL_OK")
</pallas_src>

<mosaic_0001>
module attributes {stable_mosaic.version = 11 : i64} {
  func.func @kernel(%arg0: i32, %arg1: memref<16x32xbf16, #tpu.memory_space<vmem>>, %arg2: memref<3x128x128xbf16, #tpu.memory_space<vmem>>, %arg3: memref<3x1x128xf32, #tpu.memory_space<vmem>>, %arg4: memref<16x128xbf16, #tpu.memory_space<vmem>>) attributes {dimension_semantics = [#tpu.dimension_semantics<parallel>], iteration_bounds = array<i64: 1>, scalar_prefetch = 0 : i64, scratch_operands = 0 : i64, tpu.core_type = #tpu.core_type<tc>, window_params = [{transform_indices = @transform_0, window_bounds = array<i64: 16, 32>}, {pipeline_mode = #tpu.pipeline_mode<synchronous>, transform_indices = @transform_1, window_bounds = array<i64: 3, 128, 128>}, {pipeline_mode = #tpu.pipeline_mode<synchronous>, transform_indices = @transform_2, window_bounds = array<i64: 3, 1, 128>}, {transform_indices = @transform_3, window_bounds = array<i64: 16, 128>}]} {
    %c0 = arith.constant 0 : index
    %c0_0 = arith.constant 0 : index
    %0 = vector.load %arg1[%c0, %c0_0] : memref<16x32xbf16, #tpu.memory_space<vmem>>, vector<16x32xbf16>
    %c0_1 = arith.constant 0 : index
    %c0_2 = arith.constant 0 : index
    %c0_3 = arith.constant 0 : index
    %1 = vector.load %arg2[%c0_1, %c0_2, %c0_3] : memref<3x128x128xbf16, #tpu.memory_space<vmem>>, vector<1x32x128xbf16>
    %2 = vector.shape_cast %1 : vector<1x32x128xbf16> to vector<32x128xbf16>
    %cst = arith.constant dense<0.000000e+00> : vector<16x128xf32>
    %3 = tpu.matmul %0, %2, %cst {dimension_numbers = #tpu.dot_dimension_numbers<[1], [0], [0], [1], [0, 0, 1, 1], [], []>} : vector<16x32xbf16>, vector<32x128xbf16>, vector<16x128xf32> -> vector<16x128xf32>
    %c0_4 = arith.constant 0 : index
    %c0_5 = arith.constant 0 : index
    %c0_6 = arith.constant 0 : index
    %4 = vector.load %arg3[%c0_4, %c0_5, %c0_6] : memref<3x1x128xf32, #tpu.memory_space<vmem>>, vector<1x1x128xf32>
    %5 = vector.shape_cast %4 : vector<1x1x128xf32> to vector<1x128xf32>
    %6 = vector.broadcast %5 : vector<1x128xf32> to vector<16x128xf32>
    %7 = arith.addf %3, %6 : vector<16x128xf32>
    %cst_7 = arith.constant 2.000000e-01 : f32
    %8 = vector.broadcast %cst_7 : f32 to vector<16x128xf32>
    %9 = arith.mulf %8, %7 : vector<16x128xf32>
    %10 = arith.maximumf %7, %9 : vector<16x128xf32>
    %c1 = arith.constant 1 : index
    %c0_8 = arith.constant 0 : index
    %c0_9 = arith.constant 0 : index
    %11 = vector.load %arg2[%c1, %c0_8, %c0_9] : memref<3x128x128xbf16, #tpu.memory_space<vmem>>, vector<1x128x128xbf16>
    %12 = vector.shape_cast %11 : vector<1x128x128xbf16> to vector<128x128xbf16>
    %13 = arith.truncf %10 : vector<16x128xf32> to vector<16x128xbf16>
    %cst_10 = arith.constant dense<0.000000e+00> : vector<16x128xf32>
    %14 = tpu.matmul %13, %12, %cst_10 {dimension_numbers = #tpu.dot_dimension_numbers<[1], [0], [0], [1], [0, 0, 1, 1], [], []>} : vector<16x128xbf16>, vector<128x128xbf16>, vector<16x128xf32> -> vector<16x128xf32>
    %c1_11 = arith.constant 1 : index
    %c0_12 = arith.constant 0 : index
    %c0_13 = arith.constant 0 : index
    %15 = vector.load %arg3[%c1_11, %c0_12, %c0_13] : memref<3x1x128xf32, #tpu.memory_space<vmem>>, vector<1x1x128xf32>
    %16 = vector.shape_cast %15 : vector<1x1x128xf32> to vector<1x128xf32>
    %17 = vector.broadcast %16 : vector<1x128xf32> to vector<16x128xf32>
    %18 = arith.addf %14, %17 : vector<16x128xf32>
    %cst_14 = arith.constant 2.000000e-01 : f32
    %19 = vector.broadcast %cst_14 : f32 to vector<16x128xf32>
    %20 = arith.mulf %19, %18 : vector<16x128xf32>
    %21 = arith.maximumf %18, %20 : vector<16x128xf32>
    %c2 = arith.constant 2 : index
    %c0_15 = arith.constant 0 : index
    %c0_16 = arith.constant 0 : index
    %22 = vector.load %arg2[%c2, %c0_15, %c0_16] : memref<3x128x128xbf16, #tpu.memory_space<vmem>>, vector<1x128x128xbf16>
    %23 = vector.shape_cast %22 : vector<1x128x128xbf16> to vector<128x128xbf16>
    %24 = arith.truncf %21 : vector<16x128xf32> to vector<16x128xbf16>
    %cst_17 = arith.constant dense<0.000000e+00> : vector<16x128xf32>
    %25 = tpu.matmul %24, %23, %cst_17 {dimension_numbers = #tpu.dot_dimension_numbers<[1], [0], [0], [1], [0, 0, 1, 1], [], []>} : vector<16x128xbf16>, vector<128x128xbf16>, vector<16x128xf32> -> vector<16x128xf32>
    %c2_18 = arith.constant 2 : index
    %c0_19 = arith.constant 0 : index
    %c0_20 = arith.constant 0 : index
    %26 = vector.load %arg3[%c2_18, %c0_19, %c0_20] : memref<3x1x128xf32, #tpu.memory_space<vmem>>, vector<1x1x128xf32>
    %27 = vector.shape_cast %26 : vector<1x1x128xf32> to vector<1x128xf32>
    %28 = vector.broadcast %27 : vector<1x128xf32> to vector<16x128xf32>
    %29 = arith.addf %25, %28 : vector<16x128xf32>
    %cst_21 = arith.constant dense<0xFF800000> : vector<16xf32>
    %30 = vector.multi_reduction <maximumf>, %29, %cst_21 [1] : vector<16x128xf32> to vector<16xf32>
    %31 = vector.shape_cast %30 : vector<16xf32> to vector<16x1xf32>
    %32 = vector.broadcast %31 : vector<16x1xf32> to vector<16x128xf32>
    %33 = arith.subf %29, %32 : vector<16x128xf32>
    %34 = math.exp %33 : vector<16x128xf32>
    %cst_22 = arith.constant dense<0.000000e+00> : vector<16xf32>
    %35 = vector.multi_reduction <add>, %34, %cst_22 [1] : vector<16x128xf32> to vector<16xf32>
    %36 = vector.shape_cast %35 : vector<16xf32> to vector<16x1xf32>
    %37 = tpu.reciprocal %36 {approx = true} : vector<16x1xf32> -> vector<16x1xf32>
    %38 = vector.broadcast %37 : vector<16x1xf32> to vector<16x128xf32>
    %39 = arith.mulf %34, %38 : vector<16x128xf32>
    %40 = arith.truncf %39 : vector<16x128xf32> to vector<16x128xbf16>
    %c0_23 = arith.constant 0 : index
    %c0_24 = arith.constant 0 : index
    %41 = vector.load %arg4[%c0_23, %c0_24] : memref<16x128xbf16, #tpu.memory_space<vmem>>, vector<16x128xbf16>
    tpu.vector_store %arg4[%c0_23, %c0_24], %40 {strides = array<i32>} : memref<16x128xbf16, #tpu.memory_space<vmem>>, vector<16x128xbf16>,
    return
  }
  func.func @transform_0(%arg0: i32) -> (i32, i32) {
    %c0_i32 = arith.constant 0 : i32
    %c0_i32_0 = arith.constant 0 : i32
    return %arg0, %c0_i32 : i32, i32
  }
  func.func @transform_1(%arg0: i32) -> (i32, i32, i32) {
    %c0_i32 = arith.constant 0 : i32
    %c0_i32_0 = arith.constant 0 : i32
    %c0_i32_1 = arith.constant 0 : i32
    %c0_i32_2 = arith.constant 0 : i32
    return %c0_i32, %c0_i32_0, %c0_i32_1 : i32, i32, i32
  }
  func.func @transform_2(%arg0: i32) -> (i32, i32, i32) {
    %c0_i32 = arith.constant 0 : i32
    %c0_i32_0 = arith.constant 0 : i32
    %c0_i32_1 = arith.constant 0 : i32
    %c0_i32_2 = arith.constant 0 : i32
    return %c0_i32, %c0_i32_0, %c0_i32_1 : i32, i32, i32
  }
  func.func @transform_3(%arg0: i32) -> (i32, i32) {
    %c0_i32 = arith.constant 0 : i32
    %c0_i32_0 = arith.constant 0 : i32
    return %arg0, %c0_i32 : i32, i32
  }
}

</mosaic_0001>

<bundles_post_ra>
// kernel: actor1_arm_forward.1
= control target key start
LH: loop header
LB: loop body
LE: loop exit
PB: predicated region body
PF: predicated region fallthrough
CT: control target
= control target key end

     0   :  { %8 = vsyncpa [#allocation3], 0  ;;  %s534_s12 = smov [#allocation2]   ;;  %s610_s0 = inlined_call_operand.vmem [shape: bf16[16,32], index: 0, kind: input, shape index: {}]   ;;  %s611_s1 = inlined_call_operand.hbm [shape: bf16[3,128,128], index: 1, kind: input, shape index: {}]   ;;  %s612_s2 = inlined_call_operand.vmem [shape: f32[3,1,128], index: 2, kind: input, shape index: {}]   ;;  %s613_s3 = inlined_call_operand.vmem [shape: bf16[16,128], index: 3, kind: output, shape index: {}]  }
   0x1   :  { %s16_s13 = sshll.u32 %s534_s12, 4  ;;  %s510_s16 = scalar_lea.hbm %s611_s1, 3072  ;;  %s17_s13 = int_to_ptr.vmem [resolvable:$true] %s16_s13 }
   0x2   :  { %p511_p0 = scmp.ne.s32.totalorder %s611_s1, %s510_s16  ;;  %p514_p1 = scmp.lt.u32.totalorder %s510_s16, %s611_s1 }
   0x4   :  { %p516_p2 = pnand %p514_p1, %p511_p0 }
   0x6   :  { %519 = shalt.err (!%p516_p2)
}
   0x7   :  { %s520_s21 = scalar_lea.vmem %s17_s13, 3072  ;;  %p525_p4 = scmp.lt.s32.totalorder %s17_s13, %s17_s13 }
   0x8   :  { %p521_p3 = scmp.ne.s32.totalorder %s17_s13, %s520_s21  ;;  %p526_p5 = scmp.lt.s32.totalorder %s520_s21, %s520_s21 }
   0xa   :  { %p527_p6 = por %p526_p5, %p525_p4 }
   0xc   :  { %p528_p7 = pnand %p527_p6, %p521_p3 }
   0xe   :  { %531 = shalt.err (!%p528_p7)
}
   0xf   :  { %s535_s22 = smov 64   ;;  %s536_s23 = smov 4  }
  0x10   :  { %22 = dma.hbm_to_vmem [thread:$0]  %s611_s1, 3072, %s17_s13, [#allocation3], %s535_s22, %s535_s22, %s536_s23  }
  0x11   :  { %532 = dma.done.wait [#allocation3], 3072  }
  0x12   :  { %533 = vsyncadd [#allocation3], 4294964224  ;;  %v537_v0 = vmov 0.0   ;;  %vm538_vm0 = vmmov 0   ;;  %v483_v1 = vld [vmem:[#allocation2] sm:$0xff]   ;;  %v484_v2 = vld [vmem:[#allocation2 + $0x8] sm:$0xff]  }
  0x13   :  { %430 = vmatprep.subr.bf16.mxu0 %v537_v0  ;;  %434 = vmatprep.mubr.msk.bf16.mxu0 %vm538_vm0, %v537_v0  ;;  %v486_v3 = vld [vmem:[#allocation2 + $0x40] sm:$0xff]   ;;  %v487_v5 = vld [vmem:[#allocation2 + $0x48] sm:$0xff]   ;;  %vm59_vm1 = vcmask 261120   ;;  %v488_v6 = vld [vmem:[#allocation2 + $0x50] sm:$0xff]  }
  0x14   :  { %438 = vmatprep.subr.bf16.mxu1 %v537_v0  ;;  %454 = vmatprep.mubr.msk.bf16.mxu1 %vm538_vm0, %v537_v0  ;;  %v485_v4 = vld [vmem:[%s610_s0] sm:$0xff]   ;;  %v489_v7 = vld [vmem:[#allocation2 + $0x58] sm:$0xff]   ;;  %v491_v9 = vld [vmem:[#allocation2 + $0x68] sm:$0xff]  }
  0x15   :  { %431 = vmatpush3.bf16.msra.mxu0 %v483_v1  ;;  %439 = vmatpush3.bf16.msra.mxu1 %v486_v3  ;;  %v490_v8 = vld [vmem:[#allocation2 + $0x60] sm:$0xff]   ;;  %v492_v10 = vld [vmem:[#allocation2 + $0x70] sm:$0xff]   ;;  %v493_v11 = vld [vmem:[#allocation2 + $0x78] sm:$0xff]  }
  0x16   :  { %432 = vmatprep.subr.bf16.mxu0 %v537_v0  ;;  %440 = vmatprep.subr.bf16.mxu1 %v537_v0  ;;  %v494_v12 = vld [vmem:[#allocation2 + $0x80] sm:$0xff]   ;;  %v495_v13 = vld [vmem:[#allocation2 + $0x88] sm:$0xff]   ;;  %v496_v14 = vld [vmem:[#allocation2 + $0x90] sm:$0xff]  }
  0x17   :  { %v497_v15 = vld [vmem:[#allocation2 + $0x98] sm:$0xff]   ;;  %v498_v16 = vld [vmem:[#allocation2 + $0xa0] sm:$0xff]   ;;  %v499_v29 = vld [vmem:[#allocation2 + $0xa8] sm:$0xff]  }
  0x18   :  { %v375_v17 = vld [vmem:[%s612_s2] ss:$0 sm:$0xff]  ;;  %v500_v30 = vld [vmem:[#allocation2 + $0xb0] sm:$0xff]   ;;  %v501_v31 = vld [vmem:[#allocation2 + $0xb8] sm:$0xff]  }
  0x19   :  { %433 = vmatpush3.bf16.msra.mxu0 %v484_v2  ;;  %441 = vmatpush3.bf16.msra.mxu1 %v487_v5  ;;  %v381_v32 = vld [vmem:[%s612_s2 + $0x1] ss:$0 sm:$0xff]  ;;  %v391_v44 = vld [vmem:[%s612_s2 + $0x2] ss:$0 sm:$0xff] }
  0x1a   :  { %458 = vmatprep.subr.bf16.mxu0 %v537_v0  ;;  %442 = vmatprep.subr.bf16.mxu1 %v537_v0 }
  0x1c   :  { %435 = vmatmul.mubr.msk.bf16.vlgmr.msra.gmra.mrb[0].mxu0 %vm59_vm1, %v485_v4 }
  0x1d   :  { %474 = vmatprep.mubr.msk.bf16.mxu0 %vm538_vm0, %v537_v0  ;;  %443 = vmatpush3.bf16.msra.mxu1 %v488_v6 }
  0x1e   :  { %444 = vmatprep.subr.bf16.mxu1 %v537_v0  ;;  %459 = vmatpush3.bf16.msra.mxu0 %v494_v12 }
  0x1f   :  { %460 = vmatprep.subr.bf16.mxu0 %v537_v0 }
  0x21   :  { %445 = vmatpush3.bf16.msra.mxu1 %v489_v7 }
  0x22   :  { %446 = vmatprep.subr.bf16.mxu1 %v537_v0  ;;  %461 = vmatpush3.bf16.msra.mxu0 %v495_v13 }
  0x23   :  { %462 = vmatprep.subr.bf16.mxu0 %v537_v0 }
  0x25   :  { %447 = vmatpush3.bf16.msra.mxu1 %v490_v8 }
  0x26   :  { %448 = vmatprep.subr.bf16.mxu1 %v537_v0  ;;  %463 = vmatpush3.bf16.msra.mxu0 %v496_v14 }
  0x27   :  { %464 = vmatprep.subr.bf16.mxu0 %v537_v0 }
  0x29   :  { %449 = vmatpush3.bf16.msra.mxu1 %v491_v9 }
  0x2a   :  { %450 = vmatprep.subr.bf16.mxu1 %v537_v0  ;;  %465 = vmatpush3.bf16.msra.mxu0 %v497_v15 }
  0x2b   :  { %466 = vmatprep.subr.bf16.mxu0 %v537_v0 }
  0x2d   :  { %451 = vmatpush3.bf16.msra.mxu1 %v492_v10 }
  0x2e   :  { %452 = vmatprep.subr.bf16.mxu1 %v537_v0  ;;  %467 = vmatpush3.bf16.msra.mxu0 %v498_v16 }
  0x2f   :  { %468 = vmatprep.subr.bf16.mxu0 %v537_v0 }
  0x31   :  { %453 = vmatpush3.bf16.msra.mxu1 %v493_v11 }
  0x32   :  { %469 = vmatpush3.bf16.msra.mxu0 %v499_v29 }
  0x33   :  { %470 = vmatprep.subr.bf16.mxu0 %v537_v0 }
  0x36   :  { %471 = vmatpush3.bf16.msra.mxu0 %v500_v30 }
  0x37   :  { %472 = vmatprep.subr.bf16.mxu0 %v537_v0 }
  0x3a   :  { %473 = vmatpush3.bf16.msra.mxu0 %v501_v31 }
  0xef   :  { %v97_v18 = vpop.f32.mrb[0].mxu0 }
  0xf0   :  { %v98_v19 = vadd.f32 %v375_v17, %v97_v18  ;;  %v436_v20 = vpop.f32.mrb[1].mxu0 }
  0xf1   :  { %v100_v21 = vpop.f32.mrb[2].mxu0 }
  0xf2   :  { %v104_v22 = vmul.f32 0.2, %v98_v19  ;;  %v101_v23 = vadd.f32 %v375_v17, %v100_v21  ;;  %v437_v24 = vpop.f32.mrb[3].mxu0 }
  0xf4   :  { %v105_v25 = vmul.f32 0.2, %v101_v23  ;;  %v106_v26 = vmax.f32 %v98_v19, %v104_v22 }
  0xf6   :  { %v107_v27 = vmax.f32 %v101_v23, %v105_v25 }
  0xf8   :  { %v125_v28 = vpack.c.bf16 %v107_v27, %v106_v26 }
  0xfa   :  { %455 = vmatmul.mubr.bf16.vlgmr.msra.gmra.mrb[0].mxu1 %v125_v28 }
 0x1cd   :  { %v216_v33 = vpop.f32.mrb[0].mxu1 }
 0x1ce   :  { %v217_v34 = vadd.f32 %v381_v32, %v216_v33  ;;  %v456_v35 = vpop.f32.mrb[1].mxu1 }
 0x1cf   :  { %v219_v36 = vpop.f32.mrb[2].mxu1 }
 0x1d0   :  { %v223_v37 = vmul.f32 0.2, %v217_v34  ;;  %v220_v38 = vadd.f32 %v381_v32, %v219_v36  ;;  %v457_v39 = vpop.f32.mrb[3].mxu1 }
 0x1d2   :  { %v224_v40 = vmul.f32 0.2, %v220_v38  ;;  %v225_v41 = vmax.f32 %v217_v34, %v223_v37 }
 0x1d4   :  { %v226_v42 = vmax.f32 %v220_v38, %v224_v40 }
 0x1d6   :  { %v244_v43 = vpack.c.bf16 %v226_v42, %v225_v41 }
 0x1d8   :  { %475 = vmatmul.mubr.bf16.vlgmr.msra.gmra.mrb[4].mxu0 %v244_v43 }
 0x2ab   :  { %v335_v45 = vpop.f32.mrb[4].mxu0 }
 0x2ac   :  { %v336_v46 = vadd.f32 %v391_v44, %v335_v45  ;;  %v476_v47 = vpop.f32.mrb[5].mxu0 }
 0x2ad   :  { %v338_v48 = vpop.f32.mrb[6].mxu0 }
 0x2ae   :  { %342 = vmax.xlane.f32.xlu0 %v336_v46  ;;  %v477_v49 = vpop.f32.mrb[7].mxu0  ;;  %v339_v50 = vadd.f32 %v391_v44, %v338_v48 }
 0x2b2   :  { %344 = vmax.xlane.f32.xlu0 %v339_v50 }
 0x33b   :  { %v343_v51 = vpop.xlane.xlu0 %342 }
 0x33c   :  { %v346_v52 = vsub.f32 %v336_v46, %v343_v51 }
 0x33e   :  { %v348_v53 = vmul.f32 1.442695, %v346_v52 }
 0x33f   :  { %v345_v54 = vpop.xlane.xlu0 %344 }
 0x340   :  { %502 = vpow2.f32 %v348_v53  ;;  %v347_v55 = vsub.f32 %v339_v50, %v345_v54 }
 0x342   :  { %v350_v56 = vmul.f32 1.442695, %v347_v55 }
 0x344   :  { %504 = vpow2.f32 %v350_v56 }
 0x34a   :  { %v503_v57 = vpop.eup %502 }
 0x34b   :  { %352 = vadd.xlane.f32.xlu1 %v503_v57 }
 0x34e   :  { %v505_v58 = vpop.eup %504 }
 0x34f   :  { %354 = vadd.xlane.f32.xlu1 %v505_v58 }
 0x3d8   :  { %v353_v59 = vpop.xlane.xlu1 %352 }
 0x3d9   :  { %506 = vrcp.f32 %v353_v59 }
 0x3dc   :  { %v355_v60 = vpop.xlane.xlu1 %354 }
 0x3dd   :  { %508 = vrcp.f32 %v355_v60 }
 0x3e3   :  { %v507_v61 = vpop.eup %506 }
 0x3e4   :  { %v358_v63 = vmul.f32 %v507_v61, %v503_v57 }
 0x3e7   :  { %v509_v62 = vpop.eup %508 }
 0x3e8   :  { %v359_v0 = vmul.f32 %v509_v62, %v505_v58 }
 0x3ea   :  { %v407_v1 = vpack.c.bf16 %v359_v0, %v358_v63 }
 0x3ec   :  { %408 = vst [vmem:[%s613_s3] sm:$0xff] %v407_v1  }
 0x3ed   :  { %374 = vsyncpa [#allocation3], 1 }

</bundles_post_ra>
